<compile_context>
chip_gen: v7x
topology: tpu7x:2x2x1
jax: 0.10.0
libtpu: 0.0.40
codegen_flags: <defaults>
</compile_context>

<pallas_src>
import jax
import jax.numpy as jnp
from jax.experimental import pallas as pl
from jax.experimental.pallas import tpu as pltpu


def _round_up(x, m):
    return -(-x // m) * m


# ----------------------------------------------------------------------------
# Glue: coordinate conversion (cx, cy, w, h) -> (x_min, y_min, x_max, y_max)
# ----------------------------------------------------------------------------
def cxcy_to_xy(cxcy):
    return jnp.concatenate(
        [cxcy[:, :2] - cxcy[:, 2:] / 2.0,     # x_min, y_min
         cxcy[:, :2] + cxcy[:, 2:] / 2.0],    # x_max, y_max
        axis=1)


# ----------------------------------------------------------------------------
# Pallas kernel: IoU between a row-tile of boxes and a lane-tile of priors
# ----------------------------------------------------------------------------
def _jaccard_kernel(boxes_ref, priors_ref, ov_ref):
    # boxes_ref : (TF, 4)   xy format, boxes on sublanes
    # priors_ref: (4, TP)   xy format, coordinate-major, priors lane-dense
    # ov_ref    : (TF, TP)
    b = boxes_ref[...]
    p = priors_ref[...]

    bx0 = b[:, 0:1]             # (TF, 1)
    by0 = b[:, 1:2]
    bx1 = b[:, 2:3]
    by1 = b[:, 3:4]

    px0 = p[0:1, :]             # (1, TP)
    py0 = p[1:2, :]
    px1 = p[2:3, :]
    py1 = p[3:4, :]

    # intersection widths / heights, clamped at 0    -> (TF, TP)
    iw = jnp.maximum(jnp.minimum(bx1, px1) - jnp.maximum(bx0, px0), 0.0)
    ih = jnp.maximum(jnp.minimum(by1, py1) - jnp.maximum(by0, py0), 0.0)
    inter = iw * ih

    area_b = (bx1 - bx0) * (by1 - by0)      # (TF, 1)
    area_p = (px1 - px0) * (py1 - py0)      # (1, TP)
    # No epsilon clamp (matches the reference divide); padded priors have
    # area 1 and padded boxes only ever meet positive-area priors.
    union = area_b + area_p - inter

    # EUP approximate reciprocal instead of a VALU-heavy f32 divide.
    ov_ref[...] = (inter * pl.reciprocal(union, approx=True)).astype(ov_ref.dtype)


# ----------------------------------------------------------------------------
# Constant-priors preprocessing (hoisted out of the per-call path)
# ----------------------------------------------------------------------------
def pad_priors_for_kernel(prior_xy, *, max_tp=2048):
    """(P, 4) xy priors -> coordinate-major (4, Pp) padded to a multiple of TP.

    Returns (priors_t_padded, n_priors, TP)."""
    P = int(prior_xy.shape[0])
    TP = min(max_tp, _round_up(P, 128))       # lane tile, multiple of 128
    Pp = _round_up(P, TP)                     # pad up to the tile, not down
    pt = jnp.asarray(prior_xy, jnp.float32).T
    if Pp != P:
        dummy = jnp.tile(jnp.array([[2.0], [2.0], [3.0], [3.0]], jnp.float32),
                         (1, Pp - P))         # unit-area dummy priors
        pt = jnp.concatenate([pt, dummy], axis=1)
    return pt, P, TP


# ----------------------------------------------------------------------------
# Batched IoU: boxes (B, F, 4) x padded priors (4, Pp) -> overlap (B, F, P)
# ----------------------------------------------------------------------------
def find_jaccard_overlap_pallas(boxes, priors_t_padded, n_priors, tp, *,
                                out_dtype=jnp.float32, max_tf=512):
    B, F, _ = boxes.shape
    P = int(n_priors)
    Pp = int(priors_t_padded.shape[1])
    TP = int(tp)

    BF = B * F
    out_itemsize = jnp.dtype(out_dtype).itemsize
    row_q = 16 if out_itemsize == 2 else 8    # full (16,128)/(8,128) store tiles
    TF = min(max_tf, _round_up(BF, row_q))

    # v7x megacore: guarantee >= 2 blocks along a parallel axis when possible
    # (halve the row tile first; it does not disturb the hoisted prior padding).
    if (Pp // TP == 1) and (_round_up(BF, TF) // TF == 1):
        if TF > row_q:
            TF = max(row_q, _round_up(TF // 2, row_q))
        elif TP % 256 == 0:
            TP //= 2                          # Pp stays a multiple of the new TP

    BFp = _round_up(BF, TF)                   # pad rows up to the chosen tile

    boxes2 = jnp.asarray(boxes, jnp.float32).reshape(BF, 4)
    if BFp != BF:
        boxes2 = jnp.pad(boxes2, ((0, BFp - BF), (0, 0)))   # zero-area boxes

    cost = pl.CostEstimate(
        flops=11 * BFp * Pp,
        transcendentals=BFp * Pp,
        bytes_accessed=BFp * Pp * out_itemsize + BFp * 16 + Pp * 16)

    ov = pl.pallas_call(
        _jaccard_kernel,
        out_shape=jax.ShapeDtypeStruct((BFp, Pp), out_dtype),
        grid_spec=pltpu.PrefetchScalarGridSpec(
            num_scalar_prefetch=0,
            grid=(BFp // TF, Pp // TP),
            in_specs=[
                pl.BlockSpec((TF, 4), lambda i, j: (i, 0)),
                pl.BlockSpec((4, TP), lambda i, j: (0, j)),
            ],
            out_specs=pl.BlockSpec((TF, TP), lambda i, j: (i, j)),
        ),
        compiler_params=pltpu.CompilerParams(
            dimension_semantics=("parallel", "parallel")),
        cost_estimate=cost,
    )(boxes2, priors_t_padded)

    return ov[:BF, :P].reshape(B, F, P)


# ----------------------------------------------------------------------------
# Module-equivalent wrapper
# ----------------------------------------------------------------------------
class PyramidBoxLoss:
    def __init__(self, priors_cxcy, threshold=0.5, supervised=True,
                 overlap_dtype=jnp.float32, max_tp=2048, max_tf=512):
        self.priors_cxcy = jnp.asarray(priors_cxcy, jnp.float32)
        self.prior_xy = cxcy_to_xy(self.priors_cxcy)
        # Hoisted per-call-free preprocessing: coordinate-major (4, Pp) layout,
        # f32 cast, and lane padding to a multiple of the prior tile.
        (self.prior_xy_t_padded,
         self._n_priors,
         self._tp) = pad_priors_for_kernel(self.prior_xy, max_tp=max_tp)
        self.threshold = threshold
        self.supervised = supervised
        self.overlap_dtype = overlap_dtype
        self.max_tf = max_tf

    def forward(self, predicted_locs, predicted_scores, boxes, labels):
        batch_size = predicted_locs.shape[0]

        # mirrors the reference zero-initialized tensors
        true_locs = jnp.zeros([batch_size, 1, 4], dtype=jnp.float32)
        true_classes = jnp.zeros([batch_size, 1], dtype=jnp.int32)

        # per-image loop body (overlap = find_jaccard_overlap(boxes[i], priors)),
        # batched by folding the batch into the row axis of one Pallas call.
        overlap = find_jaccard_overlap_pallas(
            boxes, self.prior_xy_t_padded, self._n_priors, self._tp,
            out_dtype=self.overlap_dtype, max_tf=self.max_tf)

        # TODO(synk): loc_loss / conf_loss are undefined (never computed) in the
        # reference forward; returning zeros here instead of faking a loss.
        loc_loss = jnp.zeros((), jnp.float32)
        conf_loss = jnp.zeros((), jnp.float32)

        del true_locs, true_classes, predicted_scores, labels
        return loc_loss, conf_loss, overlap

    __call__ = forward


# ----------------------------------------------------------------------------
# Demo
# ----------------------------------------------------------------------------
if __name__ == "__main__":
    key = jax.random.PRNGKey(0)
    k1, k2, k3, k4, k5, k6 = jax.random.split(key, 6)

    batch = 2
    n_faces = 8
    n_priors = 128
    n_classes = 2

    # priors in (cx, cy, w, h), deterministic
    centers = jax.random.uniform(k1, (n_priors, 2), jnp.float32, 0.1, 0.9)
    sizes = jax.random.uniform(k2, (n_priors, 2), jnp.float32, 0.05, 0.2)
    priors_cxcy = jnp.concatenate([centers, sizes], axis=1)

    # ground-truth boxes in xy format (valid: x_min < x_max, y_min < y_max)
    mins = jax.random.uniform(k3, (batch, n_faces, 2), jnp.float32, 0.0, 0.6)
    wh = jax.random.uniform(k4, (batch, n_faces, 2), jnp.float32, 0.1, 0.3)
    boxes = jnp.concatenate([mins, mins + wh], axis=-1)

    predicted_locs = jax.random.normal(k5, (batch, n_priors, 4), jnp.float32)
    predicted_scores = jax.random.normal(k6, (batch, n_priors, n_classes),
                                         jnp.float32)
    labels = jnp.ones((batch, n_faces), jnp.int32)

    criterion = PyramidBoxLoss(priors_cxcy, threshold=0.5, supervised=True)
    loc_loss, conf_loss, overlap = criterion(predicted_locs, predicted_scores,
                                             boxes, labels)
    jax.block_until_ready((loc_loss, conf_loss, overlap))

    # sanity check against a pure-JAX reference IoU (tolerance loosened for the
    # approx EUP reciprocal)
    def ref_iou(bx, pr):
        lo = jnp.maximum(bx[:, None, :2], pr[None, :, :2])
        hi = jnp.minimum(bx[:, None, 2:], pr[None, :, 2:])
        inter = jnp.prod(jnp.maximum(hi - lo, 0.0), axis=-1)
        ab = jnp.prod(bx[:, 2:] - bx[:, :2], axis=-1)[:, None]
        ap = jnp.prod(pr[:, 2:] - pr[:, :2], axis=-1)[None, :]
        return inter / (ab + ap - inter)

    ref = jnp.stack([ref_iou(boxes[i], criterion.prior_xy)
                     for i in range(batch)])
    assert overlap.shape == (batch, n_faces, n_priors)
    assert jnp.allclose(overlap, ref, atol=5e-3, rtol=5e-3)

    print("KERNEL_OK")
</pallas_src>

<mosaic_0001>
module attributes {stable_mosaic.version = 11 : i64} {
  func.func @_jaccard_kernel(%arg0: i32, %arg1: i32, %arg2: memref<8x4xf32, #tpu.memory_space<vmem>>, %arg3: memref<4x128xf32, #tpu.memory_space<vmem>>, %arg4: memref<8x128xf32, #tpu.memory_space<vmem>>) attributes {dimension_semantics = [#tpu.dimension_semantics<parallel>, #tpu.dimension_semantics<parallel>], iteration_bounds = array<i64: 2, 1>, scalar_prefetch = 0 : i64, scratch_operands = 0 : i64, tpu.core_type = #tpu.core_type<tc>, window_params = [{transform_indices = @transform_0, window_bounds = array<i64: 8, 4>}, {transform_indices = @transform_1, window_bounds = array<i64: 4, 128>}, {transform_indices = @transform_2, window_bounds = array<i64: 8, 128>}]} {
    %c0 = arith.constant 0 : index
    %c0_0 = arith.constant 0 : index
    %0 = vector.load %arg2[%c0, %c0_0] : memref<8x4xf32, #tpu.memory_space<vmem>>, vector<8x4xf32>
    %c0_1 = arith.constant 0 : index
    %c0_2 = arith.constant 0 : index
    %1 = vector.load %arg3[%c0_1, %c0_2] : memref<4x128xf32, #tpu.memory_space<vmem>>, vector<4x128xf32>
    %2 = vector.extract_strided_slice %0 {offsets = [0, 0], sizes = [8, 1], strides = [1, 1]} : vector<8x4xf32> to vector<8x1xf32>
    %3 = vector.extract_strided_slice %0 {offsets = [0, 1], sizes = [8, 1], strides = [1, 1]} : vector<8x4xf32> to vector<8x1xf32>
    %4 = vector.extract_strided_slice %0 {offsets = [0, 2], sizes = [8, 1], strides = [1, 1]} : vector<8x4xf32> to vector<8x1xf32>
    %5 = vector.extract_strided_slice %0 {offsets = [0, 3], sizes = [8, 1], strides = [1, 1]} : vector<8x4xf32> to vector<8x1xf32>
    %6 = vector.extract_strided_slice %1 {offsets = [0, 0], sizes = [1, 128], strides = [1, 1]} : vector<4x128xf32> to vector<1x128xf32>
    %7 = vector.extract_strided_slice %1 {offsets = [1, 0], sizes = [1, 128], strides = [1, 1]} : vector<4x128xf32> to vector<1x128xf32>
    %8 = vector.extract_strided_slice %1 {offsets = [2, 0], sizes = [1, 128], strides = [1, 1]} : vector<4x128xf32> to vector<1x128xf32>
    %9 = vector.extract_strided_slice %1 {offsets = [3, 0], sizes = [1, 128], strides = [1, 1]} : vector<4x128xf32> to vector<1x128xf32>
    %10 = vector.broadcast %4 : vector<8x1xf32> to vector<8x128xf32>
    %11 = vector.broadcast %8 : vector<1x128xf32> to vector<8x128xf32>
    %12 = arith.minimumf %10, %11 : vector<8x128xf32>
    %13 = vector.broadcast %2 : vector<8x1xf32> to vector<8x128xf32>
    %14 = vector.broadcast %6 : vector<1x128xf32> to vector<8x128xf32>
    %15 = arith.maximumf %13, %14 : vector<8x128xf32>
    %16 = arith.subf %12, %15 : vector<8x128xf32>
    %cst = arith.constant 0.000000e+00 : f32
    %17 = vector.broadcast %cst : f32 to vector<8x128xf32>
    %18 = arith.maximumf %16, %17 : vector<8x128xf32>
    %19 = vector.broadcast %5 : vector<8x1xf32> to vector<8x128xf32>
    %20 = vector.broadcast %9 : vector<1x128xf32> to vector<8x128xf32>
    %21 = arith.minimumf %19, %20 : vector<8x128xf32>
    %22 = vector.broadcast %3 : vector<8x1xf32> to vector<8x128xf32>
    %23 = vector.broadcast %7 : vector<1x128xf32> to vector<8x128xf32>
    %24 = arith.maximumf %22, %23 : vector<8x128xf32>
    %25 = arith.subf %21, %24 : vector<8x128xf32>
    %cst_3 = arith.constant 0.000000e+00 : f32
    %26 = vector.broadcast %cst_3 : f32 to vector<8x128xf32>
    %27 = arith.maximumf %25, %26 : vector<8x128xf32>
    %28 = arith.mulf %18, %27 : vector<8x128xf32>
    %29 = arith.subf %4, %2 : vector<8x1xf32>
    %30 = arith.subf %5, %3 : vector<8x1xf32>
    %31 = arith.mulf %29, %30 : vector<8x1xf32>
    %32 = arith.subf %8, %6 : vector<1x128xf32>
    %33 = arith.subf %9, %7 : vector<1x128xf32>
    %34 = arith.mulf %32, %33 : vector<1x128xf32>
    %35 = vector.broadcast %31 : vector<8x1xf32> to vector<8x128xf32>
    %36 = vector.broadcast %34 : vector<1x128xf32> to vector<8x128xf32>
    %37 = arith.addf %35, %36 : vector<8x128xf32>
    %38 = arith.subf %37, %28 : vector<8x128xf32>
    %39 = tpu.reciprocal %38 {approx = true} : vector<8x128xf32> -> vector<8x128xf32>
    %40 = arith.mulf %28, %39 : vector<8x128xf32>
    %c0_4 = arith.constant 0 : index
    %c0_5 = arith.constant 0 : index
    %41 = vector.load %arg4[%c0_4, %c0_5] : memref<8x128xf32, #tpu.memory_space<vmem>>, vector<8x128xf32>
    tpu.vector_store %arg4[%c0_4, %c0_5], %40 {strides = array<i32>} : memref<8x128xf32, #tpu.memory_space<vmem>>, vector<8x128xf32>,
    return
  }
  func.func @transform_0(%arg0: i32, %arg1: i32) -> (i32, i32) {
    %c0_i32 = arith.constant 0 : i32
    %c0_i32_0 = arith.constant 0 : i32
    return %arg0, %c0_i32 : i32, i32
  }
  func.func @transform_1(%arg0: i32, %arg1: i32) -> (i32, i32) {
    %c0_i32 = arith.constant 0 : i32
    %c0_i32_0 = arith.constant 0 : i32
    return %c0_i32, %arg1 : i32, i32
  }
  func.func @transform_2(%arg0: i32, %arg1: i32) -> (i32, i32) {
    %c0_i32 = arith.constant 0 : i32
    return %arg0, %arg1 : i32, i32
  }
}

</mosaic_0001>

<bundles_post_ra>
// kernel: tpu_custom_call.1
= control target key start
LH: loop header
LB: loop body
LE: loop exit
PB: predicated region body
PF: predicated region fallthrough
CT: control target
= control target key end

     0   :  { %7 = vsyncpa [#allocation3], 0  ;;  %s641_s0 = inlined_call_operand.vmem [shape: f32[16,4], index: 0, kind: input, shape index: {}]   ;;  %s642_s1 = inlined_call_operand.vmem [shape: f32[4,128], index: 1, kind: input, shape index: {}]   ;;  %s643_s2 = inlined_call_operand.hbm [shape: f32[16,128], index: 2, kind: output, shape index: {}]  }
   0x1   :  { %9 = vsyncpa [#allocation3 + $0x1], 0  ;;  %s526_s9 = smov 0   ;;  %s528_s10 = smov 0  }
   0x2   :  { %s530_s11 = smov 0   ;;  %s532_s12 = smov 0  }
   0x3   :  { %s534_s13 = smov 0   ;;  %s536_s14 = smov 0  }
   0x4 LB: > { %s343_s15 = sadd.s32 4294967295, %s502_s14   ;;  %s344_s16 = sadd.s32 4294967294, %s502_s14   ;;  %s502_s14 = sphi %s536_s14, %s15_s14   ;;  %s498_s13 = sphi %s534_s13, %s650_s13   ;;  %s494_s12 = sphi %s532_s12, %s649_s12   ;;  %s490_s11 = sphi %s530_s11, %s648_s11   ;;  %s486_s10 = sphi %s528_s10, %s647_s10   ;;  %s482_s9 = sphi %s526_s9, %s646_s9  }
   0x5   : > { %s27_s17 = sadd.s32 1, %s498_s13  ;;  %s88_s18 = sadd.s32 1, %s490_s11 }
   0x6   : > { %p29_p0 = scmp.ge.s32.totalorder %s27_s17, 2  ;;  %p98_p1 = scmp.ne.s32.totalorder %s490_s11, %s486_s10 }
   0x7   : > { %p99_p2 = scmp.eq.s32.totalorder %s343_s15, 1  ;;  %p104_p3 = scmp.ne.s32.totalorder %s486_s10, %s482_s9 }
   0x8   : > { %s652_s17 = smov (%p29_p0, %s27_s17), 0  ;;  %p105_p5 = scmp.eq.s32.totalorder %s344_s16, 1 }
   0x9   : > { %p566_p4 = por %p99_p2, %p98_p1  ;;  %s83_s20 = ssub.s32 %s498_s13, %s652_s17 }
   0xa   : > { %p348_p6 = scmp.ge.s32.totalorder %s502_s14, 1  ;;  %p86_p7 = scmp.eq.s32.totalorder %s83_s20, 0 }
   0xb   : > { %p573_p8 = por %p105_p5, %p104_p3  ;;  %p137_p9 = scmp.lt.s32.totalorder %s502_s14, 3 }
   0xc   : > { %s579_s22 = scalar_select %p86_p7, %s490_s11, %s88_s18  }
   0xd   : > { %p138_p10 = pnand %p348_p6, %p137_p9 }
   0xe   : > { %p162_p11 = scmp.lt.s32.totalorder (!%p138_p10), %s494_s12, 1  ;;  %v504_v0 = vmov (!%p138_p10), 2   ;;  %v505_v1 = vmov (!%p138_p10), 3   ;;  %s506_s28 = smov (!%p138_p10), 2   ;;  %v507_v3 = vmov (!%p138_p10), 0   ;;  %v508_v4 = vmov (!%p138_p10), 1  }
   0xf   : > { %141 = sbr.rel (%p138_p10) target bundleno = 420 (0x1a4), region = 28  ;;  %416 = vset.pattern.permute.xlu1 (!%p138_p10), %v504_v0  ;;  %418 = vset.pattern.permute.xlu0 (!%p138_p10), %v505_v1  ;;  %s509_s29 = smov (!%p138_p10), 127   ;;  %v177_v9 = vlaneseq (!%p138_p10)  ;;  %v171_v12 = vld [vmem:[%s642_s1] sm:$0xf] (!%p138_p10) }
  0x10   : > { %v224_v18 = vrot.slane (!%p138_p10), %v171_v12, 6  ;;  %s159_s4 = sand.u32 (!%p138_p10), 1, %s486_s10   ;;  %s352_s6 = sshll.u32 (!%p138_p10), %s494_s12, 7 }
  0x11   : > { %v178_v11 = vshrl.u32 (!%p138_p10), %v177_v9, 7  ;;  %s349_s5 = sshll.u32 (!%p138_p10), %s159_s4, 3  ;;  %s594_s18 = scalar_lea.hbm (!%p138_p10), %s643_s2, %s352_s6 }
  0x12   : > { %v226_v23 = vsub.f32 (!%p138_p10), %v171_v12, %v224_v18  ;;  %s161_s7 = scalar_lea.vmem (!%p138_p10), [#allocation2], %s349_s5  ;;  %s246_s20 = scalar_lea.sflag (!%p138_p10), [#allocation3], %s159_s4 }
  0x13   : > { %v179_v13 = vsub.s32 (!%p138_p10), 2, %v178_v11  ;;  %v188_v15 = vsub.s32 (!%p138_p10), 0, %v178_v11  ;;  %v208_v16 = vsub.s32 (!%p138_p10), 1, %v178_v11  ;;  %v199_v17 = vsub.s32 (!%p138_p10), 3, %v178_v11  ;;  %s260_s8 = sshll.u32 (!%p138_p10), %s161_s7, 4  ;;  %s596_s8 = int_to_ptr.vmem [resolvable:$true] %s260_s8 }
  0x14   : > { %v228_v30 = vrot.slane (!%p138_p10), %v226_v23, 1 }
  0x15   : > { %v180_v19 = vrot.slane (!%p138_p10), %v171_v12, %v179_v13  ;;  %v189_v20 = vrot.slane (!%p138_p10), %v171_v12, %v188_v15  ;;  %v209_v21 = vrot.slane (!%p138_p10), %v171_v12, %v208_v16  ;;  %v200_v22 = vrot.slane (!%p138_p10), %v171_v12, %v199_v17 }
  0x16   : > { %s163_s23 = scalar_select %p162_p11, %s494_s12, 1  ;;  %v230_v33 = vmul.f32 %v228_v30, %v226_v23 }
  0x17   : > { %s510_s12 = smov [#allocation2]  }
  0x18   : > { %s350_s24 = sshll.u32 %s163_s23, 3  ;;  %v239_v36 = vrot.slane %v230_v33, %v179_v13  ;;  %s424_s23 = scalar_lea.vmem %s596_s8, 128 }
  0x19   : > { %s165_s27 = scalar_lea.vmem %s641_s0, %s350_s24  ;;  %p425_p12 = scmp.ne.s32.totalorder %s596_s8, %s424_s23 }
  0x1a   : > { %v170_v2 = vld [vmem:[%s165_s27] sm:$0xff]  ;;  %s428_s24 = sshll.u32 %s510_s12, 4  ;;  %s429_s24 = int_to_ptr.vmem [resolvable:$false] %s428_s24 }
  0x1b   : > { %214 = vrot.lane.b32.xlu0 %v170_v2, %s506_s28  ;;  %174 = vperm.xlu1 %416, %v170_v2   ;;  %p426_p13 = pnand %p425_p12, %p566_p4  ;;  %s430_s25 = scalar_lea.vmem %s429_s24, 256 }
  0x1c   : > { %p431_p1 = scmp.lt.s32.totalorder %s596_s8, %s429_s24  ;;  %p432_p2 = scmp.lt.s32.totalorder %s430_s25, %s424_s23 }
  0x1d   : > { %p427_p0 = pneg %p426_p13 }
  0x1e   : > { %p433_p3 = por %p432_p2, %p431_p1 }
  0x1f   : > { %417 = vset.pattern.permute.xlu1 %v507_v3 }
  0x20   : > { %183 = vperm.xlu1 %417, %v170_v2   ;;  %p434_p5 = pnand %p433_p3, %p427_p0 }
  0x24   : > { %419 = vset.pattern.permute.xlu1 %v508_v4 }
  0x25   : > { %203 = vperm.xlu1 %419, %v170_v2  }
  0x29   : > { %420 = vset.pattern.permute.xlu1 %v504_v0 }
  0x8d   : > { %v215_v5 = vpop.permute.xlu0 %214 }
  0x8e   : > { %v217_v6 = vsub.f32 %v170_v2, %v215_v5 }
  0x90   : > { %219 = vrot.lane.b32.xlu0 %v217_v6, %s509_s29 }
  0x94   : > { %194 = vperm.xlu0 %418, %v170_v2  }
  0x98   : > { %421 = vset.pattern.permute.xlu0 %v504_v0 }
  0x9a   : > { %v175_v10 = vpop.permute.xlu1 %174 }
  0x9b   : > { %v181_v26 = vmin.f32 %v175_v10, %v180_v19 }
  0x9f   : > { %v184_v14 = vpop.permute.xlu1 %183 }
  0xa0   : > { %v190_v27 = vmax.f32 %v184_v14, %v189_v20 }
  0xa2   : > { %v191_v31 = vsub.f32 %v181_v26, %v190_v27 }
  0xa4   : > { %v204_v24 = vpop.permute.xlu1 %203  ;;  %v192_v34 = vmax.f32 %v191_v31, 0.0 }
  0xa5   : > { %v210_v28 = vmax.f32 %v204_v24, %v209_v21 }
 0x102   : > { %v220_v7 = vpop.permute.xlu0 %219 }
 0x103   : > { %v222_v8 = vmul.f32 %v220_v7, %v217_v6 }
 0x105   : > { %233 = vperm.xlu1 %420, %v222_v8  }
 0x113   : > { %v195_v25 = vpop.permute.xlu0 %194 }
 0x114   : > { %v201_v29 = vmin.f32 %v195_v25, %v200_v22 }
 0x116   : > { %v211_v32 = vsub.f32 %v201_v29, %v210_v28 }
 0x118   : > { %v212_v35 = vmax.f32 %v211_v32, 0.0 }
 0x11a   : > { %v213_v38 = vmul.f32 %v212_v35, %v192_v34 }
 0x184   : > { %v234_v37 = vpop.permute.xlu1 %233 }
 0x185   : > { %v240_v39 = vadd.f32 %v239_v36, %v234_v37 }
 0x187   : > { %v241_v40 = vsub.f32 %v240_v39, %v213_v38 }
 0x189   : > { %422 = vrcp.f32 %v241_v40 }
 0x193   : > { %v423_v41 = vpop.eup %422 }
 0x194   : > { %v243_v42 = vmul.f32 %v423_v41, %v213_v38 }
 0x196   : > { %244 = vst [vmem:[%s161_s7] sm:$0xff] %v243_v42 }
 0x197   : > { %437 = shalt.err (!%p434_p5)
}
 0x198   : > { %s438_s26 = scalar_lea.hbm %s594_s18, 128  ;;  %s442_s29 = scalar_lea.hbm %s643_s2, 256 }
 0x199   : > { %p439_p6 = scmp.ne.s32.totalorder %s594_s18, %s438_s26  ;;  %p443_p10 = scmp.lt.u32.totalorder %s594_s18, %s643_s2 }
 0x19a   : > { %p444_p11 = scmp.lt.u32.totalorder %s442_s29, %s438_s26  ;;  %p446_p13 = scmp.lt.u32.totalorder %s438_s26, %s594_s18 }
 0x19b   : > { %p440_p7 = pnand %p439_p6, %p566_p4 }
 0x19c   : > { %p445_p12 = por %p444_p11, %p443_p10 }
 0x19d   : > { %p441_p9 = pneg %p440_p7 }
 0x19e   : > { %p447_p0 = por %p446_p13, %p445_p12 }
 0x1a0   : > { %p448_p1 = pnand %p447_p0, %p441_p9 }
 0x1a2   : > { %451 = shalt.err (!%p448_p1)
}
 0x1a3   : > { %355 = dma.vmem_to_hbm [thread:$0]  (%p566_p4), %s596_s8, 128, %s594_s18, %s246_s20  }
 0x1a4 PF: > { %p361_p2 = scmp.ge.s32.totalorder %s502_s14, 2  ;;  %s272_s4 = sand.u32 1, %s482_s9  }
 0x1a5   : > { %s273_s5 = scalar_lea.sflag [#allocation3], %s272_s4 }
 0x1a6   : > { %p358_p3 = pnand %p361_p2, %p573_p8 }
 0x1a8   : > { %477 = dma.done.wait (!%p358_p3), %s273_s5, 128  }
 0x1a9   : > { %479 = vsyncadd (!%p358_p3), %s273_s5, 4294967168  ;;  %s15_s14 = sadd.s32 1, %s502_s14   ;;  %s646_s9 = smov %s486_s10 }
 0x1aa   : > { %p12_p5 = scmp.ge.s32.totalorder %s15_s14, 4   ;;  %s647_s10 = smov %s490_s11 }
 0x1ab   : > { %s648_s11 = smov %s579_s22  ;;  %s649_s12 = smov %s498_s13 }
 0x1ac   : > { %s650_s13 = smov %s652_s17  ;;  %14 = sbr.rel (!%p12_p5) target bundleno = 4 (0x4), region = 66 }
 0x1b3   :  { %278 = vsyncpa [#allocation3], 1 }
 0x1b4   :  { %280 = vsyncpa [#allocation3 + $0x1], 1 }

</bundles_post_ra>
